<compile_context>
chip_gen: v6e
topology: v6e:2x2x1
jax: 0.10.0
libtpu: 0.0.40
codegen_flags: <defaults>
</compile_context>

<pallas_src>
import jax
import jax.numpy as jnp
from jax.experimental import pallas as pl
from jax.experimental.pallas import tpu as pltpu


_LANE = 128


def _gelu_exact(x):
    # PyTorch / HF get_activation('gelu') default: exact erf-based GELU.
    return 0.5 * x * (1.0 + jax.lax.erf(x * jnp.float32(0.7071067811865476)))


def _round_up(a, b):
    return ((a + b - 1) // b) * b


def _choose_row_tile(M, tm_max):
    """Pick the row tile: as large as possible (amortize per-step overhead and
    DMA setup), lane-aligned.  If there is more than one grid step, nudge the
    step count to an even number so v7x's two TensorCores both get work on the
    "parallel" row axis; on single-TC chips (v5e/v6e) the extra step this may
    add costs ~0.35 us, which is noise."""
    tm = min(tm_max, _round_up(M, _LANE))
    grid = pl.cdiv(M, tm)
    if grid > 1 and grid % 2 == 1:
        tm = _round_up(pl.cdiv(M, grid + 1), _LANE)
    return tm


def _make_discriminator_kernel(num_layers):
    """Kernel args: x_ref, (wT_ref, b_ref) * num_layers, wp_ref, bp_ref, o_ref.

    wT refs are (d_out, d_in); b refs are (d_out, 1); wp is (1, d_last);
    bp is (1, 1).  Hidden state is kept as (features, tm) so the GELU runs on
    lane-dense vregs and the final logits land lane-dense as (1, tm)."""

    def kernel(*refs):
        x_ref = refs[0]
        o_ref = refs[-1]
        p = refs[1:-1]

        x = x_ref[...].astype(jnp.float32)                    # (tm, d_in)

        # Layer 0: contract the two feature dims directly (W0^T @ x^T); the
        # MXU does the "transpose", producing h in (d_out, tm) layout.
        wt0 = p[0][...].astype(jnp.float32)                   # (d_out0, d_in)
        b0 = p[1][...].astype(jnp.float32)                    # (d_out0, 1)
        h = jax.lax.dot_general(
            wt0, x,
            dimension_numbers=(((1,), (1,)), ((), ())),
            preferred_element_type=jnp.float32,
        ) + b0                                                # (d_out0, tm)
        h = _gelu_exact(h)

        # Remaining layers: plain MXU matmuls in the (features, tm) layout.
        for l in range(1, num_layers):
            wt = p[2 * l][...].astype(jnp.float32)            # (d_out, d_prev)
            b = p[2 * l + 1][...].astype(jnp.float32)         # (d_out, 1)
            h = jnp.dot(wt, h, preferred_element_type=jnp.float32) + b
            h = _gelu_exact(h)

        wp = p[-2][...].astype(jnp.float32)                   # (1, d_last)
        bp = p[-1][...].astype(jnp.float32)                   # (1, 1)

        # Final N=1 projection comes out lane-dense as (1, tm) — no (tm, 1)
        # intermediate, no masked lane-sparse store, no transpose.
        logits = jnp.dot(wp, h, preferred_element_type=jnp.float32) + bp
        o_ref[...] = _gelu_exact(logits)[None].astype(o_ref.dtype)  # (1,1,tm)

    return kernel


def custom_discriminator_forward(x, layer_params, pred_w, pred_b, *, tm_max=1024):
    """x: (B, S, D_in).  layer_params: list of (W(in,out), b(out,)).
    pred_w: (D_last, 1), pred_b: (1,).  Returns (B, S) float32 logits."""
    B, S, D = x.shape
    M = B * S
    tm = _choose_row_tile(M, tm_max)
    grid = pl.cdiv(M, tm)

    # No pad, no eager dtype cast: the last block may overhang x (garbage rows
    # are per-row independent and sliced off below); casting happens in-kernel
    # (a no-op for f32 inputs).
    xf = x.reshape(M, D)

    in_specs = [pl.BlockSpec((tm, D), lambda i: (i, 0))]
    args = [xf]
    flops_per_row = 0
    for (w, b) in layer_params:
        din, dout = w.shape
        wt = jnp.transpose(w).astype(jnp.float32)             # (dout, din), tiny
        bt = b.reshape(dout, 1).astype(jnp.float32)
        in_specs.append(pl.BlockSpec((dout, din), lambda i: (0, 0)))
        in_specs.append(pl.BlockSpec((dout, 1), lambda i: (0, 0)))
        args.append(wt)
        args.append(bt)
        flops_per_row += 2 * din * dout
    d_last = pred_w.shape[0]
    in_specs.append(pl.BlockSpec((1, d_last), lambda i: (0, 0)))
    in_specs.append(pl.BlockSpec((1, 1), lambda i: (0, 0)))
    args.append(pred_w.reshape(1, d_last).astype(jnp.float32))  # (d_last,1) -> row
    args.append(pred_b.reshape(1, 1).astype(jnp.float32))
    flops_per_row += 2 * d_last

    n_act_per_row = sum(w.shape[1] for (w, _) in layer_params) + 1
    param_bytes = sum(int(a.size) * 4 for a in args[1:])
    cost = pl.CostEstimate(
        flops=int(flops_per_row) * M,
        transcendentals=int(n_act_per_row) * M,
        bytes_accessed=int(M * D * x.dtype.itemsize) + int(M * 4) + param_bytes,
    )

    out = pl.pallas_call(
        _make_discriminator_kernel(len(layer_params)),
        out_shape=jax.ShapeDtypeStruct((grid, 1, tm), jnp.float32),
        grid=(grid,),
        in_specs=in_specs,
        out_specs=pl.BlockSpec((1, 1, tm), lambda i: (i, 0, 0)),
        compiler_params=pltpu.CompilerParams(
            dimension_semantics=("parallel",)),
        cost_estimate=cost,
    )(*args)

    # Lane-dense (grid, 1, tm) slab -> flat rows -> drop the overhang -> (B, S).
    # (torch.squeeze(..., dim=-1) equivalent.)
    return out.reshape(grid * tm)[:M].reshape(B, S)


def _reference_forward(x, layer_params, pred_w, pred_b):
    h = x.astype(jnp.float32)
    for (w, b) in layer_params:
        h = _gelu_exact(h @ w + b)
    logits = _gelu_exact(h @ pred_w + pred_b)
    return jnp.squeeze(logits, axis=-1)


if __name__ == "__main__":
    # Config mirroring: custom_linear = [{'input_dim': 32, 'output_dim': 64},
    #                                    {'input_dim': 64, 'output_dim': 32}]
    B, S = 2, 8
    dims = [(32, 64), (64, 32)]

    key = jax.random.PRNGKey(0)
    keys = jax.random.split(key, 2 * len(dims) + 3)

    # Deterministic parameter init (Linear weights stored as (in_dim, out_dim)).
    layer_params = []
    k_idx = 0
    for (din, dout) in dims:
        w = (jax.random.normal(keys[k_idx], (din, dout), jnp.float32)
             / jnp.sqrt(jnp.float32(din)))
        k_idx += 1
        b = 0.01 * jax.random.normal(keys[k_idx], (dout,), jnp.float32)
        k_idx += 1
        layer_params.append((w, b))

    d_last = dims[-1][1]
    pred_w = (jax.random.normal(keys[k_idx], (d_last, 1), jnp.float32)
              / jnp.sqrt(jnp.float32(d_last)))
    k_idx += 1
    pred_b = 0.01 * jax.random.normal(keys[k_idx], (1,), jnp.float32)
    k_idx += 1

    x = jax.random.normal(keys[k_idx], (B, S, dims[0][0]), jnp.float32)

    logits = custom_discriminator_forward(x, layer_params, pred_w, pred_b)
    logits = jax.block_until_ready(logits)

    ref = _reference_forward(x, layer_params, pred_w, pred_b)
    assert logits.shape == (B, S)
    assert jnp.allclose(logits, ref, atol=1e-5, rtol=1e-5)

    print("KERNEL_OK")
</pallas_src>

<mosaic_0001>
module attributes {stable_mosaic.version = 11 : i64} {
  func.func @kernel(%arg0: i32, %arg1: memref<128x32xf32, #tpu.memory_space<vmem>>, %arg2: memref<64x32xf32, #tpu.memory_space<vmem>>, %arg3: memref<64x1xf32, #tpu.memory_space<vmem>>, %arg4: memref<32x64xf32, #tpu.memory_space<vmem>>, %arg5: memref<32x1xf32, #tpu.memory_space<vmem>>, %arg6: memref<1x32xf32, #tpu.memory_space<vmem>>, %arg7: memref<1x1xf32, #tpu.memory_space<vmem>>, %arg8: memref<1x1x128xf32, #tpu.memory_space<vmem>>) attributes {dimension_semantics = [#tpu.dimension_semantics<parallel>], iteration_bounds = array<i64: 1>, scalar_prefetch = 0 : i64, scratch_operands = 0 : i64, tpu.core_type = #tpu.core_type<tc>, window_params = [{transform_indices = @transform_0, window_bounds = array<i64: 128, 32>}, {pipeline_mode = #tpu.pipeline_mode<synchronous>, transform_indices = @transform_1, window_bounds = array<i64: 64, 32>}, {pipeline_mode = #tpu.pipeline_mode<synchronous>, transform_indices = @transform_2, window_bounds = array<i64: 64, 1>}, {pipeline_mode = #tpu.pipeline_mode<synchronous>, transform_indices = @transform_3, window_bounds = array<i64: 32, 64>}, {pipeline_mode = #tpu.pipeline_mode<synchronous>, transform_indices = @transform_4, window_bounds = array<i64: 32, 1>}, {pipeline_mode = #tpu.pipeline_mode<synchronous>, transform_indices = @transform_5, window_bounds = array<i64: 1, 32>}, {pipeline_mode = #tpu.pipeline_mode<synchronous>, transform_indices = @transform_6, window_bounds = array<i64: 1, 1>}, {transform_indices = @transform_7, window_bounds = array<i64: 1, 1, 128>}]} {
    %c0 = arith.constant 0 : index
    %c0_0 = arith.constant 0 : index
    %0 = vector.load %arg1[%c0, %c0_0] : memref<128x32xf32, #tpu.memory_space<vmem>>, vector<128x32xf32>
    %c0_1 = arith.constant 0 : index
    %c0_2 = arith.constant 0 : index
    %1 = vector.load %arg2[%c0_1, %c0_2] : memref<64x32xf32, #tpu.memory_space<vmem>>, vector<64x32xf32>
    %c0_3 = arith.constant 0 : index
    %c0_4 = arith.constant 0 : index
    %2 = vector.load %arg3[%c0_3, %c0_4] : memref<64x1xf32, #tpu.memory_space<vmem>>, vector<64x1xf32>
    %cst = arith.constant dense<0.000000e+00> : vector<64x128xf32>
    %3 = tpu.matmul %1, %0, %cst {dimension_numbers = #tpu.dot_dimension_numbers<[1], [1], [0], [0], [0, 0, 1, 0], [], []>} : vector<64x32xf32>, vector<128x32xf32>, vector<64x128xf32> -> vector<64x128xf32>
    %4 = vector.broadcast %2 : vector<64x1xf32> to vector<64x128xf32>
    %5 = arith.addf %3, %4 : vector<64x128xf32>
    %cst_5 = arith.constant 5.000000e-01 : f32
    %6 = vector.broadcast %cst_5 : f32 to vector<64x128xf32>
    %7 = arith.mulf %6, %5 : vector<64x128xf32>
    %cst_6 = arith.constant 0.707106769 : f32
    %8 = vector.broadcast %cst_6 : f32 to vector<64x128xf32>
    %9 = arith.mulf %5, %8 : vector<64x128xf32>
    %10 = math.erf %9 : vector<64x128xf32>
    %cst_7 = arith.constant 1.000000e+00 : f32
    %11 = vector.broadcast %cst_7 : f32 to vector<64x128xf32>
    %12 = arith.addf %11, %10 : vector<64x128xf32>
    %13 = arith.mulf %7, %12 : vector<64x128xf32>
    %c0_8 = arith.constant 0 : index
    %c0_9 = arith.constant 0 : index
    %14 = vector.load %arg4[%c0_8, %c0_9] : memref<32x64xf32, #tpu.memory_space<vmem>>, vector<32x64xf32>
    %c0_10 = arith.constant 0 : index
    %c0_11 = arith.constant 0 : index
    %15 = vector.load %arg5[%c0_10, %c0_11] : memref<32x1xf32, #tpu.memory_space<vmem>>, vector<32x1xf32>
    %cst_12 = arith.constant dense<0.000000e+00> : vector<32x128xf32>
    %16 = tpu.matmul %14, %13, %cst_12 {dimension_numbers = #tpu.dot_dimension_numbers<[1], [0], [0], [1], [0, 0, 1, 1], [], []>} : vector<32x64xf32>, vector<64x128xf32>, vector<32x128xf32> -> vector<32x128xf32>
    %17 = vector.broadcast %15 : vector<32x1xf32> to vector<32x128xf32>
    %18 = arith.addf %16, %17 : vector<32x128xf32>
    %cst_13 = arith.constant 5.000000e-01 : f32
    %19 = vector.broadcast %cst_13 : f32 to vector<32x128xf32>
    %20 = arith.mulf %19, %18 : vector<32x128xf32>
    %cst_14 = arith.constant 0.707106769 : f32
    %21 = vector.broadcast %cst_14 : f32 to vector<32x128xf32>
    %22 = arith.mulf %18, %21 : vector<32x128xf32>
    %23 = math.erf %22 : vector<32x128xf32>
    %cst_15 = arith.constant 1.000000e+00 : f32
    %24 = vector.broadcast %cst_15 : f32 to vector<32x128xf32>
    %25 = arith.addf %24, %23 : vector<32x128xf32>
    %26 = arith.mulf %20, %25 : vector<32x128xf32>
    %c0_16 = arith.constant 0 : index
    %c0_17 = arith.constant 0 : index
    %27 = vector.load %arg6[%c0_16, %c0_17] : memref<1x32xf32, #tpu.memory_space<vmem>>, vector<1x32xf32>
    %c0_18 = arith.constant 0 : index
    %c0_19 = arith.constant 0 : index
    %28 = vector.load %arg7[%c0_18, %c0_19] : memref<1x1xf32, #tpu.memory_space<vmem>>, vector<1x1xf32>
    %cst_20 = arith.constant dense<0.000000e+00> : vector<1x128xf32>
    %29 = tpu.matmul %27, %26, %cst_20 {dimension_numbers = #tpu.dot_dimension_numbers<[1], [0], [0], [1], [0, 0, 1, 1], [], []>} : vector<1x32xf32>, vector<32x128xf32>, vector<1x128xf32> -> vector<1x128xf32>
    %30 = vector.broadcast %28 : vector<1x1xf32> to vector<1x128xf32>
    %31 = arith.addf %29, %30 : vector<1x128xf32>
    %cst_21 = arith.constant 5.000000e-01 : f32
    %32 = vector.broadcast %cst_21 : f32 to vector<1x128xf32>
    %33 = arith.mulf %32, %31 : vector<1x128xf32>
    %cst_22 = arith.constant 0.707106769 : f32
    %34 = vector.broadcast %cst_22 : f32 to vector<1x128xf32>
    %35 = arith.mulf %31, %34 : vector<1x128xf32>
    %36 = math.erf %35 : vector<1x128xf32>
    %cst_23 = arith.constant 1.000000e+00 : f32
    %37 = vector.broadcast %cst_23 : f32 to vector<1x128xf32>
    %38 = arith.addf %37, %36 : vector<1x128xf32>
    %39 = arith.mulf %33, %38 : vector<1x128xf32>
    %40 = vector.shape_cast %39 : vector<1x128xf32> to vector<1x1x128xf32>
    %c0_24 = arith.constant 0 : index
    %c0_25 = arith.constant 0 : index
    %c0_26 = arith.constant 0 : index
    %41 = vector.load %arg8[%c0_24, %c0_25, %c0_26] : memref<1x1x128xf32, #tpu.memory_space<vmem>>, vector<1x1x128xf32>
    tpu.vector_store %arg8[%c0_24, %c0_25, %c0_26], %40 {strides = array<i32>} : memref<1x1x128xf32, #tpu.memory_space<vmem>>, vector<1x1x128xf32>,
    return
  }
  func.func @transform_0(%arg0: i32) -> (i32, i32) {
    %c0_i32 = arith.constant 0 : i32
    %c0_i32_0 = arith.constant 0 : i32
    return %arg0, %c0_i32 : i32, i32
  }
  func.func @transform_1(%arg0: i32) -> (i32, i32) {
    %c0_i32 = arith.constant 0 : i32
    %c0_i32_0 = arith.constant 0 : i32
    %c0_i32_1 = arith.constant 0 : i32
    return %c0_i32, %c0_i32_0 : i32, i32
  }
  func.func @transform_2(%arg0: i32) -> (i32, i32) {
    %c0_i32 = arith.constant 0 : i32
    %c0_i32_0 = arith.constant 0 : i32
    %c0_i32_1 = arith.constant 0 : i32
    return %c0_i32, %c0_i32_0 : i32, i32
  }
  func.func @transform_3(%arg0: i32) -> (i32, i32) {
    %c0_i32 = arith.constant 0 : i32
    %c0_i32_0 = arith.constant 0 : i32
    %c0_i32_1 = arith.constant 0 : i32
    return %c0_i32, %c0_i32_0 : i32, i32
  }
  func.func @transform_4(%arg0: i32) -> (i32, i32) {
    %c0_i32 = arith.constant 0 : i32
    %c0_i32_0 = arith.constant 0 : i32
    %c0_i32_1 = arith.constant 0 : i32
    return %c0_i32, %c0_i32_0 : i32, i32
  }
  func.func @transform_5(%arg0: i32) -> (i32, i32) {
    %c0_i32 = arith.constant 0 : i32
    %c0_i32_0 = arith.constant 0 : i32
    %c0_i32_1 = arith.constant 0 : i32
    return %c0_i32, %c0_i32_0 : i32, i32
  }
  func.func @transform_6(%arg0: i32) -> (i32, i32) {
    %c0_i32 = arith.constant 0 : i32
    %c0_i32_0 = arith.constant 0 : i32
    %c0_i32_1 = arith.constant 0 : i32
    return %c0_i32, %c0_i32_0 : i32, i32
  }
  func.func @transform_7(%arg0: i32) -> (i32, i32, i32) {
    %c0_i32 = arith.constant 0 : i32
    %c0_i32_0 = arith.constant 0 : i32
    %c0_i32_1 = arith.constant 0 : i32
    return %arg0, %c0_i32, %c0_i32_0 : i32, i32, i32
  }
}

</mosaic_0001>

<bundles_post_ra>
// kernel: tpu_custom_call.1
= control target key start
LH: loop header
LB: loop body
LE: loop exit
PB: predicated region body
PF: predicated region fallthrough
CT: control target
= control target key end

     0   :  { %s988_s0 = inlined_call_operand.vmem [shape: f32[16,32], index: 0, kind: input, shape index: {}]   ;;  %s989_s1 = inlined_call_operand.vmem [shape: f32[64,32], index: 1, kind: input, shape index: {}]   ;;  %s990_s2 = inlined_call_operand.vmem [shape: f32[64,1], index: 2, kind: input, shape index: {}]   ;;  %s991_s3 = inlined_call_operand.vmem [shape: f32[32,64], index: 3, kind: input, shape index: {}]   ;;  %s992_s4 = inlined_call_operand.vmem [shape: f32[32,1], index: 4, kind: input, shape index: {}]   ;;  %s993_s5 = inlined_call_operand.vmem [shape: f32[1,32], index: 5, kind: input, shape index: {}]   ;;  %s994_s6 = inlined_call_operand.<no memory space> [shape: f32[1,1], index: 6, kind: input, shape index: {}]   ;;  %s995_s7 = inlined_call_operand.hbm [shape: f32[1,1,128], index: 7, kind: output, shape index: {}]  }
   0x1   :  { %v12_v0 = vstv %s994_s6 }
   0x2   :  { %13 = vst [vmem:[#allocation2] sm:$0x1] %v12_v0 }
   0x3   :  { %v44_v1 = vld [vmem:[%s988_s0 + $0x78] sm:$0xff]  ;;  %vm101_vm0 = vcmask 261120   ;;  %v43_v2 = vld [vmem:[%s988_s0 + $0x70] sm:$0xff]  ;;  %v770_v3 = vmov 0   ;;  %v42_v4 = vld [vmem:[%s988_s0 + $0x68] sm:$0xff] }
   0x4   :  { %639 = vmatprep.subr.msk.mxu0 %vm101_vm0, %v44_v1  ;;  %720 = vset.pattern.permute.xlu0 %v770_v3  ;;  %v45_v5 = vld [vmem:[%s989_s1] sm:$0xff]  ;;  %v60_v7 = vld [vmem:[%s990_s2 + $0x38] sm:$0xff]  ;;  %v58_v8 = vld [vmem:[%s990_s2 + $0x28] sm:$0xff] }
   0x5   :  { %640 = vmatpush3.xpose.msk.msra.mxu0 %vm101_vm0, %v44_v1  ;;  %721 = vset.pattern.permute.xlu1 %v770_v3  ;;  %v41_v6 = vld [vmem:[%s988_s0 + $0x60] sm:$0xff]  ;;  %v59_v9 = vld [vmem:[%s990_s2 + $0x30] sm:$0xff]  ;;  %v40_v11 = vld [vmem:[%s988_s0 + $0x58] sm:$0xff] }
   0x6   :  { %641 = vmatprep.subr.msk.mxu0 %vm101_vm0, %v43_v2  ;;  %671 = vmatprep.mubr.msk.f32.mxu0 %vm101_vm0, %v45_v5  ;;  %v57_v10 = vld [vmem:[%s990_s2 + $0x20] sm:$0xff] }
   0x7   :  { %98 = vperm.xlu0 %720, %v60_v7   ;;  %88 = vperm.xlu1 %721, %v58_v8  }
   0x9   :  { %642 = vmatpush3.xpose.msk.msra.mxu0 %vm101_vm0, %v43_v2 }
   0xa   :  { %643 = vmatprep.subr.msk.mxu0 %vm101_vm0, %v42_v4 }
   0xd   :  { %644 = vmatpush3.xpose.msk.msra.mxu0 %vm101_vm0, %v42_v4 }
   0xe   :  { %645 = vmatprep.subr.msk.mxu0 %vm101_vm0, %v41_v6 }
   0xf   :  { %14 = vsyncpa [#allocation4], 0  ;;  %93 = vperm.xlu0 %720, %v59_v9   ;;  %83 = vperm.xlu1 %721, %v57_v10   ;;  %v56_v12 = vld [vmem:[%s990_s2 + $0x18] sm:$0xff]  ;;  %v55_v13 = vld [vmem:[%s990_s2 + $0x10] sm:$0xff]  ;;  %vm347_vm1 = vcmask 523264   ;;  %vm772_vm2 = vmmov 0  }
  0x10   :  { %v39_v14 = vld [vmem:[%s988_s0 + $0x50] sm:$0xff]  ;;  %v54_v15 = vld [vmem:[%s990_s2 + $0x8] sm:$0xff]  ;;  %v53_v16 = vld [vmem:[%s990_s2] sm:$0xff]  ;;  %s773_s29 = smov [#allocation3]  }
  0x11   :  { %646 = vmatpush3.xpose.msk.msra.mxu0 %vm101_vm0, %v41_v6  ;;  %v38_v17 = vld [vmem:[%s988_s0 + $0x48] sm:$0xff]  ;;  %v326_v18 = vld [vmem:[%s992_s4 + $0x18] sm:$0xff]  ;;  %v325_v19 = vld [vmem:[%s992_s4 + $0x10] sm:$0xff]  ;;  %s561_s6 = sshll.u32 %s773_s29, 4  ;;  %s562_s6 = int_to_ptr.vmem [resolvable:$true] %s561_s6 }
  0x12   :  { %647 = vmatprep.subr.msk.mxu0 %vm101_vm0, %v40_v11  ;;  %v37_v20 = vld [vmem:[%s988_s0 + $0x40] sm:$0xff]  ;;  %v324_v21 = vld [vmem:[%s992_s4 + $0x8] sm:$0xff]  ;;  %v36_v23 = vld [vmem:[%s988_s0 + $0x38] sm:$0xff]  ;;  %s752_s30 = scalar_lea.vmem %s562_s6, 32  ;;  %p753_p1 = scmp.lt.s32.totalorder %s562_s6, %s562_s6 }
  0x13   :  { %78 = vperm.xlu0 %720, %v56_v12   ;;  %73 = vperm.xlu1 %721, %v55_v13   ;;  %v323_v22 = vld [vmem:[%s992_s4] sm:$0xff]  ;;  %v35_v25 = vld [vmem:[%s988_s0 + $0x30] sm:$0xff]  ;;  %v34_v26 = vld [vmem:[%s988_s0 + $0x28] sm:$0xff] }
  0x14   :  { %v466_v24 = vld [vmem:[#allocation2] sm:$0x1]  ;;  %v32_v28 = vld [vmem:[%s988_s0 + $0x18] sm:$0xff]  ;;  %v31_v29 = vld [vmem:[%s988_s0 + $0x10] sm:$0xff] }
  0x15   :  { %648 = vmatpush3.xpose.msk.msra.mxu0 %vm101_vm0, %v40_v11  ;;  %v33_v27 = vld [vmem:[%s988_s0 + $0x20] sm:$0xff]  ;;  %v30_v30 = vld [vmem:[%s988_s0 + $0x8] sm:$0xff]  ;;  %v47_v33 = vld [vmem:[%s989_s1 + $0x10] sm:$0xff] }
  0x16   :  { %649 = vmatprep.subr.msk.mxu0 %vm101_vm0, %v39_v14  ;;  %v29_v31 = vld [vmem:[%s988_s0] sm:$0xff]  ;;  %v46_v32 = vld [vmem:[%s989_s1 + $0x8] sm:$0xff]  ;;  %v48_v34 = vld [vmem:[%s989_s1 + $0x18] sm:$0xff] }
  0x17   :  { %68 = vperm.xlu0 %720, %v54_v15   ;;  %63 = vperm.xlu1 %721, %v53_v16   ;;  %v49_v35 = vld [vmem:[%s989_s1 + $0x20] sm:$0xff]  ;;  %v50_v36 = vld [vmem:[%s989_s1 + $0x28] sm:$0xff]  ;;  %v51_v37 = vld [vmem:[%s989_s1 + $0x30] sm:$0xff] }
  0x18   :  { %v52_v38 = vld [vmem:[%s989_s1 + $0x38] sm:$0xff]  ;;  %v319_v39 = vld [vmem:[%s991_s3] sm:$0xff] }
  0x19   :  { %650 = vmatpush3.xpose.msk.msra.mxu0 %vm101_vm0, %v39_v14  ;;  %699 = vmatprep.mubr.msk.f32.mxu1 %vm347_vm1, %v319_v39 }
  0x1a   :  { %651 = vmatprep.subr.msk.mxu0 %vm101_vm0, %v38_v17 }
  0x1b   :  { %344 = vperm.xlu0 %720, %v326_v18   ;;  %339 = vperm.xlu1 %721, %v325_v19  }
  0x1d   :  { %652 = vmatpush3.xpose.msk.msra.mxu0 %vm101_vm0, %v38_v17 }
  0x1e   :  { %653 = vmatprep.subr.msk.mxu0 %vm101_vm0, %v37_v20 }
  0x1f   :  { %334 = vperm.xlu0 %720, %v324_v21   ;;  %329 = vperm.xlu1 %721, %v323_v22  }
  0x21   :  { %654 = vmatpush3.xpose.msk.msra.mxu0 %vm101_vm0, %v37_v20 }
  0x22   :  { %655 = vmatprep.subr.msk.mxu0 %vm101_vm0, %v36_v23 }
  0x23   :  { %469 = vperm.xlu0 %720, %v466_v24  }
  0x25   :  { %656 = vmatpush3.xpose.msk.msra.mxu0 %vm101_vm0, %v36_v23 }
  0x26   :  { %657 = vmatprep.subr.msk.mxu0 %vm101_vm0, %v35_v25 }
  0x29   :  { %658 = vmatpush3.xpose.msk.msra.mxu0 %vm101_vm0, %v35_v25 }
  0x2a   :  { %659 = vmatprep.subr.msk.mxu0 %vm101_vm0, %v34_v26 }
  0x2d   :  { %660 = vmatpush3.xpose.msk.msra.mxu0 %vm101_vm0, %v34_v26 }
  0x2e   :  { %661 = vmatprep.subr.msk.mxu0 %vm101_vm0, %v33_v27 }
  0x31   :  { %662 = vmatpush3.xpose.msk.msra.mxu0 %vm101_vm0, %v33_v27 }
  0x32   :  { %663 = vmatprep.subr.msk.mxu0 %vm101_vm0, %v32_v28 }
  0x35   :  { %664 = vmatpush3.xpose.msk.msra.mxu0 %vm101_vm0, %v32_v28 }
  0x36   :  { %665 = vmatprep.subr.msk.mxu0 %vm101_vm0, %v31_v29 }
  0x39   :  { %666 = vmatpush3.xpose.msk.msra.mxu0 %vm101_vm0, %v31_v29 }
  0x3a   :  { %667 = vmatprep.subr.msk.mxu0 %vm101_vm0, %v30_v30 }
  0x3d   :  { %668 = vmatpush3.xpose.msk.msra.mxu0 %vm101_vm0, %v30_v30 }
  0x3e   :  { %669 = vmatprep.subr.msk.mxu0 %vm101_vm0, %v29_v31 }
  0x41   :  { %670 = vmatpush3.xpose.msk.msra.mxu0 %vm101_vm0, %v29_v31 }
  0x44   :  { %672 = vmatmul.mubr.msk.f32.vlgmr.msra.gmra.mxu0 %vm101_vm0, %v46_v32 }
  0x45   :  { %674 = vmatprep.mubr.msk.f32.mxu0 %vm101_vm0, %v47_v33 }
  0x48   :  { %675 = vmatmul.mubr.msk.f32.gmra.mxu0 %vm101_vm0, %v48_v34 }
  0x49   :  { %677 = vmatprep.mubr.msk.f32.mxu0 %vm101_vm0, %v49_v35 }
  0x4c   :  { %678 = vmatmul.mubr.msk.f32.gmra.mxu0 %vm101_vm0, %v50_v36 }
  0x4d   :  { %680 = vmatprep.mubr.msk.f32.mxu0 %vm101_vm0, %v51_v37 }
  0x50   :  { %681 = vmatmul.mubr.msk.f32.gmra.mxu0 %vm101_vm0, %v52_v38 }
  0x82   :  { %v99_v40 = vpop.permute.xlu0 %98  ;;  %v89_v41 = vpop.permute.xlu1 %88 }
  0x8a   :  { %v94_v44 = vpop.permute.xlu0 %93  ;;  %v84_v45 = vpop.permute.xlu1 %83 }
  0x8e   :  { %v79_v49 = vpop.permute.xlu0 %78  ;;  %v74_v51 = vpop.permute.xlu1 %73 }
  0x92   :  { %v69_v63 = vpop.permute.xlu0 %68  ;;  %v64_v0 = vpop.permute.xlu1 %63 }
 0x104   :  { %v673_v42 = vpop.f32.mrf.mxu0 }
 0x105   :  { %v246_v1 = vadd.f32 %v673_v42, %v69_v63  ;;  %v322_v42 = vld [vmem:[%s991_s3 + $0x18] sm:$0xff] }
 0x106   :  { %v240_v43 = vpop.f32.mrf.mxu0 }
 0x107   :  { %v241_v4 = vadd.f32 %v240_v43, %v64_v0  ;;  %v288_v6 = vmul.f32 0.70710677, %v246_v1  ;;  %v280_v34 = vmul.f32 0.5, %v246_v1  ;;  %v771_v43 = vmov 0.0  }
 0x108   :  { %v676_v46 = vpop.f32.mrf.mxu0 }
 0x109   :  { %v256_v56 = vadd.f32 %v676_v46, %v79_v49  ;;  %v287_v7 = vmul.f32 0.70710677, %v241_v4  ;;  %v279_v37 = vmul.f32 0.5, %v241_v4 }
 0x10a   :  { %v250_v47 = vpop.f32.mrf.mxu0 }
 0x10b   :  { %v251_v60 = vadd.f32 %v250_v47, %v74_v51  ;;  %v290_v2 = vmul.f32 0.70710677, %v256_v56  ;;  %v282_v27 = vmul.f32 0.5, %v256_v56 }
 0x10c   :  { %v679_v48 = vpop.f32.mrf.mxu0 }
 0x10d   :  { %v266_v50 = vadd.f32 %v679_v48, %v89_v41  ;;  %v289_v5 = vmul.f32 0.70710677, %v251_v60  ;;  %v281_v31 = vmul.f32 0.5, %v251_v60  ;;  %v321_v41 = vld [vmem:[%s991_s3 + $0x10] sm:$0xff] }
 0x10e   :  { %v260_v52 = vpop.f32.mrf.mxu0 }
 0x10f   :  { %v261_v53 = vadd.f32 %v260_v52, %v84_v45  ;;  %v292_v54 = vmul.f32 0.70710677, %v266_v50  ;;  %v284_v19 = vmul.f32 0.5, %v266_v50  ;;  %v340_v45 = vpop.permute.xlu1 %339 }
 0x110   :  { %v682_v55 = vpop.f32.mrf.mxu0 }
 0x111   :  { %v276_v57 = vadd.f32 %v682_v55, %v99_v40  ;;  %v291_v58 = vmul.f32 0.70710677, %v261_v53  ;;  %722 = verf.f32 %v292_v54  ;;  %v283_v23 = vmul.f32 0.5, %v261_v53  ;;  %v320_v40 = vld [vmem:[%s991_s3 + $0x8] sm:$0xff] }
 0x112   :  { %v270_v59 = vpop.f32.mrf.mxu0 }
 0x113   :  { %v294_v61 = vmul.f32 0.70710677, %v276_v57  ;;  %v271_v62 = vadd.f32 %v270_v59, %v94_v44  ;;  %v286_v11 = vmul.f32 0.5, %v276_v57  ;;  %v345_v44 = vpop.permute.xlu0 %344  ;;  %v330_v49 = vpop.permute.xlu1 %329 }
 0x115   :  { %724 = verf.f32 %v294_v61  ;;  %v293_v3 = vmul.f32 0.70710677, %v271_v62  ;;  %v285_v14 = vmul.f32 0.5, %v271_v62 }
 0x116   :  { %726 = verf.f32 %v291_v58 }
 0x117   :  { %728 = verf.f32 %v293_v3  ;;  %v335_v46 = vpop.permute.xlu0 %334 }
 0x118   :  { %730 = verf.f32 %v290_v2 }
 0x119   :  { %732 = verf.f32 %v289_v5 }
 0x11a   :  { %734 = verf.f32 %v288_v6 }
 0x11b   :  { %736 = verf.f32 %v287_v7 }
 0x11e   :  { %v723_v8 = vpop.eup %722 }
 0x11f   :  { %v308_v17 = vadd.f32 1.0, %v723_v8 }
 0x121   :  { %v316_v24 = vmul.f32 %v308_v17, %v284_v19 }
 0x122   :  { %v725_v9 = vpop.eup %724 }
 0x123   :  { %v727_v10 = vpop.eup %726  ;;  %v310_v12 = vadd.f32 1.0, %v725_v9 }
 0x124   :  { %v729_v13 = vpop.eup %728  ;;  %v307_v21 = vadd.f32 1.0, %v727_v10 }
 0x125   :  { %v318_v15 = vmul.f32 %v310_v12, %v286_v11  ;;  %v309_v16 = vadd.f32 1.0, %v729_v13  ;;  %v731_v18 = vpop.eup %730  ;;  %v465_v12 = vld [vmem:[%s993_s5] sm:$0x1]  ;;  %v472_v13 = vlaneseq  ;;  %s748_s5 = scalar_lea.vmem %s562_s6, 16 }
 0x126   :  { %v733_v22 = vpop.eup %732  ;;  %v306_v25 = vadd.f32 1.0, %v731_v18  ;;  %v315_v28 = vmul.f32 %v307_v21, %v283_v23  ;;  %p749_p0 = scmp.ne.s32.totalorder %s562_s6, %s748_s5  ;;  %p754_p2 = scmp.lt.s32.totalorder %s752_s30, %s748_s5 }
 0x127   :  { %683 = vmatprep.subr.mxu1 %v318_v15  ;;  %v317_v20 = vmul.f32 %v309_v16, %v285_v14  ;;  %v735_v26 = vpop.eup %734  ;;  %v305_v29 = vadd.f32 1.0, %v733_v22  ;;  %v473_v14 = vshrl.u32 %v472_v13, 7  ;;  %v470_v16 = vpop.permute.xlu0 %469 }
 0x128   :  { %684 = vmatpush3.msra.mxu1 %v318_v15  ;;  %v737_v30 = vpop.eup %736  ;;  %v314_v32 = vmul.f32 %v306_v25, %v282_v27  ;;  %v304_v33 = vadd.f32 1.0, %v735_v26  ;;  %p755_p3 = por %p754_p2, %p753_p1 }
 0x129   :  { %685 = vmatprep.subr.mxu1 %v317_v20  ;;  %v313_v35 = vmul.f32 %v305_v29, %v281_v31  ;;  %v303_v36 = vadd.f32 1.0, %v737_v30  ;;  %v474_v15 = vsub.s32 0, %v473_v14 }
 0x12a   :  { %686 = vmatpush3.msra.mxu1 %v317_v20  ;;  %v312_v38 = vmul.f32 %v304_v33, %v280_v34  ;;  %p756_p4 = pnand %p755_p3, %p749_p0 }
 0x12b   :  { %687 = vmatprep.subr.mxu1 %v316_v24  ;;  %v311_v39 = vmul.f32 %v303_v36, %v279_v37  ;;  %v475_v17 = vrot.slane %v470_v16, %v474_v15 }
 0x12c   :  { %688 = vmatpush3.msra.mxu1 %v316_v24 }
 0x12d   :  { %689 = vmatprep.subr.mxu1 %v315_v28 }
 0x12e   :  { %690 = vmatpush3.msra.mxu1 %v315_v28 }
 0x12f   :  { %691 = vmatprep.subr.mxu1 %v314_v32 }
 0x130   :  { %692 = vmatpush3.msra.mxu1 %v314_v32 }
 0x131   :  { %693 = vmatprep.subr.mxu1 %v313_v35 }
 0x132   :  { %694 = vmatpush3.msra.mxu1 %v313_v35 }
 0x133   :  { %695 = vmatprep.subr.mxu1 %v312_v38 }
 0x134   :  { %696 = vmatpush3.msra.mxu1 %v312_v38 }
 0x135   :  { %697 = vmatprep.subr.mxu1 %v311_v39 }
 0x136   :  { %698 = vmatpush3.msra.mxu1 %v311_v39 }
 0x137   :  { %700 = vmatmul.mubr.msk.f32.vlgmr.msra.gmra.mxu1 %vm347_vm1, %v320_v40  ;;  %705 = vmatprep.subr.mxu1 %v771_v43 }
 0x138   :  { %702 = vmatprep.mubr.msk.f32.mxu1 %vm347_vm1, %v321_v41 }
 0x13b   :  { %703 = vmatmul.mubr.msk.f32.gmra.mxu1 %vm347_vm1, %v322_v42 }
 0x13c   :  { %713 = vmatprep.mubr.msk.f32.mxu1 %vm772_vm2, %v771_v43 }
 0x1f7   :  { %v701_v47 = vpop.f32.mrf.mxu1 }
 0x1f8   :  { %v432_v48 = vadd.f32 %v701_v47, %v335_v46 }
 0x1f9   :  { %v426_v50 = vpop.f32.mrf.mxu1 }
 0x1fa   :  { %v427_v51 = vadd.f32 %v426_v50, %v330_v49  ;;  %v450_v52 = vmul.f32 0.70710677, %v432_v48  ;;  %v446_v6 = vmul.f32 0.5, %v432_v48 }
 0x1fb   :  { %v704_v53 = vpop.f32.mrf.mxu1 }
 0x1fc   :  { %v442_v54 = vadd.f32 %v704_v53, %v345_v44  ;;  %v449_v55 = vmul.f32 0.70710677, %v427_v51  ;;  %738 = verf.f32 %v450_v52  ;;  %v445_v10 = vmul.f32 0.5, %v427_v51 }
 0x1fd   :  { %v436_v56 = vpop.f32.mrf.mxu1 }
 0x1fe   :  { %v452_v57 = vmul.f32 0.70710677, %v442_v54  ;;  %v437_v58 = vadd.f32 %v436_v56, %v340_v45  ;;  %v448_v63 = vmul.f32 0.5, %v442_v54 }
 0x200   :  { %740 = verf.f32 %v452_v57  ;;  %v451_v59 = vmul.f32 0.70710677, %v437_v58  ;;  %v447_v4 = vmul.f32 0.5, %v437_v58 }
 0x201   :  { %742 = verf.f32 %v449_v55 }
 0x202   :  { %744 = verf.f32 %v451_v59 }
 0x209   :  { %v739_v60 = vpop.eup %738 }
 0x20a   :  { %v458_v2 = vadd.f32 1.0, %v739_v60 }
 0x20c   :  { %v462_v9 = vmul.f32 %v458_v2, %v446_v6 }
 0x20d   :  { %v741_v61 = vpop.eup %740 }
 0x20e   :  { %v743_v62 = vpop.eup %742  ;;  %v460_v0 = vadd.f32 1.0, %v741_v61 }
 0x20f   :  { %v745_v1 = vpop.eup %744  ;;  %v457_v7 = vadd.f32 1.0, %v743_v62 }
 0x210   :  { %v464_v3 = vmul.f32 %v460_v0, %v448_v63  ;;  %v459_v5 = vadd.f32 1.0, %v745_v1 }
 0x211   :  { %v461_v11 = vmul.f32 %v457_v7, %v445_v10 }
 0x212   :  { %v463_v8 = vmul.f32 %v459_v5, %v447_v4  ;;  %706 = vmatpush3.msra.mxu1 %v464_v3 }
 0x213   :  { %707 = vmatprep.subr.mxu1 %v771_v43 }
 0x214   :  { %708 = vmatpush3.msra.mxu1 %v463_v8 }
 0x215   :  { %709 = vmatprep.subr.mxu1 %v771_v43 }
 0x216   :  { %710 = vmatpush3.msra.mxu1 %v462_v9 }
 0x217   :  { %711 = vmatprep.subr.mxu1 %v771_v43 }
 0x218   :  { %712 = vmatpush3.msra.mxu1 %v461_v11 }
 0x219   :  { %714 = vmatmul.mubr.msk.f32.vlgmr.msra.gmra.mxu1 %vm101_vm0, %v465_v12 }
 0x2d9   :  { %v545_v18 = vpop.f32.mrf.mxu1 }
 0x2da   :  { %v546_v19 = vadd.f32 %v545_v18, %v475_v17 }
 0x2db   :  { %v715_v20 = vpop.f32.mrf.mxu1 }
 0x2dc   :  { %v550_v21 = vmul.f32 0.70710677, %v546_v19  ;;  %v549_v23 = vmul.f32 0.5, %v546_v19 }
 0x2de   :  { %746 = verf.f32 %v550_v21 }
 0x2eb   :  { %v747_v22 = vpop.eup %746 }
 0x2ec   :  { %v552_v24 = vadd.f32 1.0, %v747_v22 }
 0x2ee   :  { %v553_v25 = vmul.f32 %v552_v24, %v549_v23 }
 0x2f0   :  { %554 = vst [vmem:[#allocation3] sm:$0x1] %v553_v25 }
 0x2f1   :  { %759 = shalt.err (!%p756_p4)
}
 0x2f2   :  { %564 = dma.vmem_to_hbm [thread:$0]  %s562_s6, 16, %s995_s7, [#allocation4]  }
 0x2f3   :  { %768 = dma.done.wait [#allocation4], 16  }
 0x2f4   :  { %769 = vsyncadd [#allocation4], 4294967280 }
 0x2f5   :  { %568 = vsyncpa [#allocation4], 1 }

</bundles_post_ra>
